<compile_context>
chip_gen: v6e
topology: v6e:2x2x1
jax: 0.10.0
libtpu: 0.0.40
codegen_flags: <defaults>
</compile_context>

<pallas_src>
import functools

import jax
import jax.numpy as jnp
from jax.experimental import pallas as pl
from jax.experimental.pallas import tpu as pltpu

_SUBLANE = 8                 # sublane (second-to-last dim) granule
_MAX_BATCH_TILE = 4096       # max rows of x per grid step
_VMEM_BUDGET = 24 * 1024 * 1024   # target per-step VMEM footprint (double-buffered)
_VMEM_LIMIT = 48 * 1024 * 1024    # scoped VMEM limit handed to Mosaic
_PALLAS_MIN_WORK = 1 << 16   # below this many MACs, a plain XLA dot is cheaper


def _round_up(n: int, m: int) -> int:
    return ((n + m - 1) // m) * m


def _cdiv(a: int, b: int) -> int:
    return (a + b - 1) // b


def _scale_matmul_kernel(x_ref, s_ref, o_ref):
    """One batch tile of y = x @ scale: a single MXU matmul, f32 accumulate."""
    o_ref[...] = jnp.dot(
        x_ref[...],
        s_ref[...],
        preferred_element_type=jnp.float32,
        precision=jax.lax.Precision.HIGHEST,
    ).astype(o_ref.dtype)


def _choose_batch_tiling(b: int, d: int, n: int, itemsize: int):
    """Pick (padded_batch, batch_tile, steps) for the grid over the batch axis."""
    b8 = _round_up(max(b, 1), _SUBLANE)

    # Enough steps to respect the max tile size.
    steps = _cdiv(b8, _MAX_BATCH_TILE)
    # >= 2 steps when there is enough work, so both v7x TensorCores are used
    # (harmless ~0.35 us extra on single-TC v5e/v6e).
    if b8 >= 2 * _SUBLANE:
        steps = max(steps, 2)

    # VMEM budget: resident scale (double-buffered) + double-buffered x / out tiles.
    scale_bytes = 2 * d * n * itemsize
    row_bytes = 2 * (d + n) * itemsize
    avail = max(_VMEM_BUDGET - scale_bytes, row_bytes * _SUBLANE)
    tb_cap = max(_SUBLANE, (avail // row_bytes) // _SUBLANE * _SUBLANE)

    tb = _round_up(_cdiv(b8, steps), _SUBLANE)
    tb = min(tb, _MAX_BATCH_TILE, tb_cap)
    steps = _cdiv(b8, tb)
    bp = tb * steps                      # batch padding bounded by ~8 rows per step
    return bp, tb, steps


@functools.lru_cache(maxsize=None)
def _build_scale_call(bp, tb, d, n, x_dtype_name, s_dtype_name, out_dtype_name):
    """Build (and cache) the pallas_call for one problem signature."""
    del x_dtype_name, s_dtype_name  # part of the cache key only
    out_dtype = jnp.dtype(out_dtype_name)
    return pl.pallas_call(
        _scale_matmul_kernel,
        out_shape=jax.ShapeDtypeStruct((bp, n), out_dtype),
        grid=(bp // tb,),
        in_specs=[
            pl.BlockSpec((tb, d), lambda i: (i, 0)),   # x: tiled over batch, full D
            pl.BlockSpec((d, n), lambda i: (0, 0)),    # scale: full, VMEM-resident
        ],
        out_specs=pl.BlockSpec((tb, n), lambda i: (i, 0)),
        compiler_params=pltpu.CompilerParams(
            dimension_semantics=("parallel",),
            vmem_limit_bytes=_VMEM_LIMIT,
        ),
    )


@jax.jit
def _scale_forward_2d(x2d, scale2d):
    """y2d = x2d @ scale2d via the Pallas kernel (batch-padded only)."""
    b, d = x2d.shape
    d2, n = scale2d.shape
    assert d == d2, "inner dimensions must match"

    out_dtype = jnp.promote_types(x2d.dtype, scale2d.dtype)
    itemsize = max(jnp.dtype(x2d.dtype).itemsize, jnp.dtype(scale2d.dtype).itemsize)

    bp, tb, _ = _choose_batch_tiling(b, d, n, itemsize)

    xp = x2d if bp == b else jnp.pad(x2d, ((0, bp - b), (0, 0)))  # zero rows: exact

    call = _build_scale_call(
        bp, tb, d, n,
        jnp.dtype(x2d.dtype).name, jnp.dtype(scale2d.dtype).name,
        jnp.dtype(out_dtype).name,
    )
    yp = call(xp, scale2d)
    return yp if bp == b else yp[:b]


def scale_layer_1d(x, scale, use_pallas=None):
    """Pallas implementation of ScaleLayer1d.forward: torch.matmul(x, scale)."""
    x = jnp.asarray(x)
    scale = jnp.asarray(scale)

    vec_scale = scale.ndim == 1
    scale2d = scale.reshape(-1, 1) if vec_scale else scale

    lead = x.shape[:-1]                    # () when x is a bare vector
    x2d = x.reshape(-1, x.shape[-1])
    b, d = x2d.shape
    n = scale2d.shape[1]

    if use_pallas is None:
        # Tiny problems (the module's real use case) are cheaper as one XLA dot.
        use_pallas = b * max(d, 1) * max(n, 1) >= _PALLAS_MIN_WORK

    if use_pallas:
        y2d = _scale_forward_2d(x2d, scale2d)
    else:
        y2d = jnp.matmul(x2d, scale2d, precision=jax.lax.Precision.HIGHEST)

    y = y2d.reshape(lead + (n,))
    if vec_scale:
        y = jnp.squeeze(y, axis=-1)        # matmul with a vector drops the last dim
    return y


if __name__ == "__main__":
    key = jax.random.PRNGKey(0)
    key, kx, ks, kv, kx2, ks2 = jax.random.split(key, 6)

    # Small shapes consistent with the module's use (scaling an action vector):
    # a batch of 8 action vectors of dim 4, scaled by a (4, 4) scale matrix.
    B, D = 8, 4
    x = jax.random.normal(kx, (B, D), jnp.float32)
    scale = jnp.diag(jax.random.uniform(ks, (D,), jnp.float32, 0.5, 2.0))

    y = jax.block_until_ready(scale_layer_1d(x, scale, use_pallas=True))
    ref = jnp.matmul(x, scale, precision=jax.lax.Precision.HIGHEST)
    assert y.shape == ref.shape
    assert y.dtype == ref.dtype
    assert jnp.allclose(y, ref, atol=1e-5, rtol=1e-5), "matrix-scale mismatch"

    # Vector-scale path: torch.matmul(x, scale_vec) -> (B,)
    scale_vec = jax.random.uniform(kv, (D,), jnp.float32, 0.5, 2.0)
    y_vec = jax.block_until_ready(scale_layer_1d(x, scale_vec, use_pallas=True))
    ref_vec = jnp.matmul(x, scale_vec, precision=jax.lax.Precision.HIGHEST)
    assert y_vec.shape == ref_vec.shape
    assert jnp.allclose(y_vec, ref_vec, atol=1e-5, rtol=1e-5), "vector-scale mismatch"

    # Slightly larger batch: exercises grid > 1 and the batch-padding path.
    B2, D2, N2 = 200, 16, 12
    x2 = jax.random.normal(kx2, (B2, D2), jnp.float32)
    scale2 = jax.random.normal(ks2, (D2, N2), jnp.float32)
    y2 = jax.block_until_ready(scale_layer_1d(x2, scale2, use_pallas=True))
    ref2 = jnp.matmul(x2, scale2, precision=jax.lax.Precision.HIGHEST)
    assert y2.shape == ref2.shape
    assert jnp.allclose(y2, ref2, atol=1e-4, rtol=1e-4), "large-batch mismatch"

    # Auto path (tiny problem -> plain XLA dot fallback) must agree too.
    y_auto = jax.block_until_ready(scale_layer_1d(x, scale))
    assert jnp.allclose(y_auto, ref, atol=1e-5, rtol=1e-5), "fallback mismatch"

    print("KERNEL_OK")
</pallas_src>

<mosaic_0001>
module attributes {stable_mosaic.version = 11 : i64} {
  func.func @_scale_matmul_kernel(%arg0: i32, %arg1: memref<8x4xf32, #tpu.memory_space<vmem>>, %arg2: memref<4x4xf32, #tpu.memory_space<vmem>>, %arg3: memref<8x4xf32, #tpu.memory_space<vmem>>) attributes {dimension_semantics = [#tpu.dimension_semantics<parallel>], iteration_bounds = array<i64: 1>, scalar_prefetch = 0 : i64, scratch_operands = 0 : i64, tpu.core_type = #tpu.core_type<tc>, window_params = [{transform_indices = @transform_0, window_bounds = array<i64: 8, 4>}, {pipeline_mode = #tpu.pipeline_mode<synchronous>, transform_indices = @transform_1, window_bounds = array<i64: 4, 4>}, {transform_indices = @transform_2, window_bounds = array<i64: 8, 4>}]} {
    %c0 = arith.constant 0 : index
    %c0_0 = arith.constant 0 : index
    %0 = vector.load %arg1[%c0, %c0_0] : memref<8x4xf32, #tpu.memory_space<vmem>>, vector<8x4xf32>
    %c0_1 = arith.constant 0 : index
    %c0_2 = arith.constant 0 : index
    %1 = vector.load %arg2[%c0_1, %c0_2] : memref<4x4xf32, #tpu.memory_space<vmem>>, vector<4x4xf32>
    %cst = arith.constant dense<0.000000e+00> : vector<8x4xf32>
    %2 = tpu.matmul %0, %1, %cst {dimension_numbers = #tpu.dot_dimension_numbers<[1], [0], [0], [1], [0, 0, 1, 1], [], []>, precision = #tpu.contract_precision<fp32>} : vector<8x4xf32>, vector<4x4xf32>, vector<8x4xf32> -> vector<8x4xf32>
    %c0_3 = arith.constant 0 : index
    %c0_4 = arith.constant 0 : index
    %3 = vector.load %arg3[%c0_3, %c0_4] : memref<8x4xf32, #tpu.memory_space<vmem>>, vector<8x4xf32>
    tpu.vector_store %arg3[%c0_3, %c0_4], %2 {strides = array<i32>} : memref<8x4xf32, #tpu.memory_space<vmem>>, vector<8x4xf32>,
    return
  }
  func.func @transform_0(%arg0: i32) -> (i32, i32) {
    %c0_i32 = arith.constant 0 : i32
    %c0_i32_0 = arith.constant 0 : i32
    return %arg0, %c0_i32 : i32, i32
  }
  func.func @transform_1(%arg0: i32) -> (i32, i32) {
    %c0_i32 = arith.constant 0 : i32
    %c0_i32_0 = arith.constant 0 : i32
    %c0_i32_1 = arith.constant 0 : i32
    return %c0_i32, %c0_i32_0 : i32, i32
  }
  func.func @transform_2(%arg0: i32) -> (i32, i32) {
    %c0_i32 = arith.constant 0 : i32
    %c0_i32_0 = arith.constant 0 : i32
    return %arg0, %c0_i32 : i32, i32
  }
}

</mosaic_0001>

<bundles_post_ra>
// kernel: _scale_forward_2d.1
= control target key start
LH: loop header
LB: loop body
LE: loop exit
PB: predicated region body
PF: predicated region fallthrough
CT: control target
= control target key end

     0   :  { %vm17_vm0 = vcmask 1043456   ;;  %vm13_vm1 = vcmask 31744   ;;  %v516_v0 = vmov 0.0   ;;  %vm517_vm2 = vmmov 0   ;;  %s550_s1 = inlined_call_operand.vmem [shape: f32[4,4], index: 1, kind: input, shape index: {}]   ;;  %s551_s0 = inlined_call_operand.vmem [shape: f32[8,4], index: 0, kind: input, shape index: {}]   ;;  %s552_s2 = inlined_call_operand.vmem [shape: f32[8,4], index: 2, kind: output, shape index: {}]  }
   0x1   :  { %484 = vmatprep.subr.mxu0 %v516_v0  ;;  %v12_v1 = vld [vmem:[%s550_s1] sm:$0xf]  ;;  %486 = vmatprep.mubr.msk.f32.mxu0 %vm517_vm2, %v516_v0 }
   0x2   :  { %v11_v2 = vld [vmem:[%s551_s0] sm:$0xff]  ;;  %v19_v3 = vsel %vm17_vm0, %v12_v1, 0  ;;  %489 = vmatprep.subr.mxu1 %v516_v0  ;;  %491 = vmatprep.mubr.msk.f32.mxu1 %vm517_vm2, %v516_v0 }
   0x3   :  { %v15_v4 = vsel %vm13_vm1, %v11_v2, 0  ;;  %v52_v5 = vand.u32 4294901760, %v19_v3 }
   0x4   :  { %v87_v6 = vand.u32 4294901760, %v15_v4 }
   0x5   :  { %485 = vmatpush3.msra.mxu0 %v52_v5  ;;  %v129_v8 = vsub.f32 %v19_v3, %v52_v5 }
   0x6   :  { %v88_v7 = vsub.f32 %v15_v4, %v87_v6  ;;  %494 = vmatprep.subr.mxu0 %v516_v0 }
   0x7   :  { %v130_v10 = vand.u32 4294901760, %v129_v8 }
   0x8   :  { %v89_v9 = vand.u32 4294901760, %v88_v7 }
   0x9   :  { %v131_v12 = vsub.f32 %v129_v8, %v130_v10 }
   0xa   :  { %v90_v11 = vsub.f32 %v88_v7, %v89_v9 }
   0xb   :  { %v132_v14 = vand.u32 4294901760, %v131_v12 }
   0xc   :  { %v91_v13 = vand.u32 4294901760, %v90_v11 }
   0xd   :  { %490 = vmatpush3.msra.mxu1 %v132_v14 }
   0xe   :  { %487 = vmatmul.mubr.f32.vlgmr.msra.gmra.mxu0 %v91_v13  ;;  %492 = vmatmul.mubr.f32.vlgmr.msra.gmra.mxu1 %v87_v6 }
   0xf   :  { %495 = vmatpush3.msra.mxu0 %v129_v8  ;;  %499 = vmatprep.subr.mxu1 %v516_v0 }
  0x10   :  { %496 = vmatprep.mubr.msk.f32.mxu0 %vm517_vm2, %v516_v0  ;;  %500 = vmatpush3.msra.mxu1 %v52_v5 }
  0x11   :  { %504 = vmatprep.subr.mxu0 %v516_v0  ;;  %501 = vmatprep.mubr.msk.f32.mxu1 %vm517_vm2, %v516_v0 }
  0x12   :  { %497 = vmatmul.mubr.f32.vlgmr.msra.gmra.mxu0 %v88_v7  ;;  %502 = vmatmul.mubr.f32.vlgmr.msra.gmra.mxu1 %v89_v9 }
  0x13   :  { %505 = vmatpush3.msra.mxu0 %v130_v10  ;;  %509 = vmatprep.subr.mxu1 %v516_v0 }
  0x14   :  { %506 = vmatprep.mubr.msk.f32.mxu0 %vm517_vm2, %v516_v0  ;;  %510 = vmatpush3.msra.mxu1 %v52_v5 }
  0x15   :  { %511 = vmatprep.mubr.msk.f32.mxu1 %vm517_vm2, %v516_v0 }
  0x16   :  { %507 = vmatmul.mubr.f32.vlgmr.msra.gmra.mxu0 %v87_v6  ;;  %512 = vmatmul.mubr.f32.vlgmr.msra.gmra.mxu1 %v87_v6 }
  0xce   :  { %v93_v15 = vpop.f32.mrf.mxu0  ;;  %v169_v16 = vpop.f32.mrf.mxu1 }
  0xcf   :  { %v170_v17 = vadd.f32 %v169_v16, %v93_v15 }
  0xd0   :  { %v488_v18 = vpop.f32.mrf.mxu0  ;;  %v493_v19 = vpop.f32.mrf.mxu1 }
  0xd2   :  { %v243_v20 = vpop.f32.mrf.mxu0  ;;  %v317_v22 = vpop.f32.mrf.mxu1 }
  0xd3   :  { %v244_v21 = vadd.f32 %v243_v20, %v170_v17 }
  0xd4   :  { %v498_v23 = vpop.f32.mrf.mxu0  ;;  %v503_v25 = vpop.f32.mrf.mxu1 }
  0xd5   :  { %v318_v24 = vadd.f32 %v317_v22, %v244_v21 }
  0xd6   :  { %v391_v26 = vpop.f32.mrf.mxu0  ;;  %v463_v28 = vpop.f32.mrf.mxu1 }
  0xd7   :  { %v392_v27 = vadd.f32 %v391_v26, %v318_v24 }
  0xd8   :  { %v508_v29 = vpop.f32.mrf.mxu0  ;;  %v513_v31 = vpop.f32.mrf.mxu1 }
  0xd9   :  { %v464_v30 = vadd.f32 %v463_v28, %v392_v27 }
  0xdb   :  { %467 = vst.msk [vmem:[%s552_s2] sm:$0xff] %vm13_vm1, %v464_v30 }

</bundles_post_ra>
